<compile_context>
chip_gen: v6e
topology: v6e:2x2x1
jax: 0.10.0
libtpu: 0.0.40
codegen_flags: <defaults>
</compile_context>

<pallas_src>
import jax
import jax.numpy as jnp
from jax.experimental import pallas as pl
from jax.experimental.pallas import tpu as pltpu

VIS_COL = 3                    # visibility column inside targets['skeleton']
LANE = 128                     # TPU lane width
MAX_TILE_ROWS = 4096           # 5 planes * 4096 * 128 * 4B = 10 MiB per step
VMEM_BUDGET = 40 * 1024 * 1024 # 20 MiB double-buffered + headroom (< 64 MiB v7x)
NUM_SPLITS = 2                 # leading "parallel" grid axis (2 TCs on v7x)
PALLAS_MIN_ELEMS = 1 << 18     # below this, fused XLA beats a pallas_call


def _round_up(x, m):
    return (x + m - 1) // m * m


def _make_kernel(tile_rows):
    groups = tile_rows // 8

    def kernel(pred_ref, targ_ref, vis_ref, out_ref):
        # pred_ref/targ_ref: (2, tile_rows, 128) x-plane / y-plane (source dtype)
        # vis_ref:           (tile_rows, 128) visibility          (source dtype)
        # out_ref:           (8, 128) f32 per-core partial sum (resident block)
        i = pl.program_id(1)

        @pl.when(i == 0)
        def _():
            out_ref[...] = jnp.zeros_like(out_ref)

        p = pred_ref[...].astype(jnp.float32)
        t = targ_ref[...].astype(jnp.float32)
        v = jnp.abs(vis_ref[...].astype(jnp.float32))   # |v| -> exact L1 identity
        d = jnp.abs(p - t)                              # (2, tile_rows, 128)
        contrib = (d[0] + d[1]) * v                     # (tile_rows, 128)
        # Fold sublane groups into the resident (8,128) accumulator: pure VPU
        # adds, fully hidden under the tile DMA.  Final XLU reduce is deferred
        # to the (tiny) wrapper-side sum over the (2,8,128) output.
        out_ref[...] += jnp.sum(contrib.reshape(groups, 8, LANE), axis=0)

    return kernel


def pedrec_loss_head(outputs, targets, *, use_pallas=None,
                     max_tile_rows=MAX_TILE_ROWS):
    """JAX equivalent of PedRecNetLossHead.forward(outputs, targets)."""
    preds = outputs                      # (B, J, Cp), Cp >= 2
    skel = targets['skeleton']           # (B, J, Ct), Ct >= VIS_COL + 1
    B, J = preds.shape[0], preds.shape[1]
    n_joints = B * J
    n_elems = n_joints * 2               # mean denominator: all B*J*2 elements

    pred_xy = preds[..., 0:2]
    targ_xy = skel[..., 0:2]
    vis = skel[..., VIS_COL]             # (B, J)

    if use_pallas is None:
        use_pallas = n_elems >= PALLAS_MIN_ELEMS
    if not use_pallas:
        # Small sizes: a pallas_call (plus repack copies) is pure overhead.
        p = pred_xy.astype(jnp.float32)
        t = targ_xy.astype(jnp.float32)
        v = vis.astype(jnp.float32)[..., None]
        return jnp.mean(jnp.abs(p * v - t * v))

    # --- Lane-dense planes in the source dtype; zero-padded tail (vis pad = 0
    # masks it and the mean denominator stays the true B*J*2). ----------------
    itemsize = min(jnp.dtype(pred_xy.dtype).itemsize,
                   jnp.dtype(targ_xy.dtype).itemsize,
                   jnp.dtype(vis.dtype).itemsize)
    row_align = max(8, 32 // max(itemsize, 1))       # f32:8, bf16:16, int8/fp8:32
    max_tile_rows = max(row_align,
                        (int(max_tile_rows) // row_align) * row_align)

    rows = pl.cdiv(n_joints, LANE)
    tile_rows = min(_round_up(rows, row_align), max_tile_rows)
    total_blocks = _round_up(pl.cdiv(rows, tile_rows), NUM_SPLITS)
    rows_pad = total_blocks * tile_rows
    n_pad = rows_pad * LANE
    bpc = total_blocks // NUM_SPLITS                 # row-blocks per split

    def xy_planes(x):                                # (B,J,2) -> (2, rows_pad, 128)
        x = x.reshape(n_joints, 2).T                 # x-plane / y-plane
        x = jnp.pad(x, ((0, 0), (0, n_pad - n_joints)))
        return x.reshape(2, rows_pad, LANE)

    def one_plane(x):                                # (B,J) -> (rows_pad, 128)
        x = x.reshape(n_joints)
        x = jnp.pad(x, (0, n_pad - n_joints))
        return x.reshape(rows_pad, LANE)

    pred_s = xy_planes(pred_xy)
    targ_s = xy_planes(targ_xy)
    vis_s = one_plane(vis)

    xy_spec = pl.BlockSpec((2, tile_rows, LANE), lambda c, i: (0, c * bpc + i, 0))
    vis_spec = pl.BlockSpec((tile_rows, LANE), lambda c, i: (c * bpc + i, 0))
    out_spec = pl.BlockSpec((None, 8, LANE), lambda c, i: (c, 0, 0))

    partials = pl.pallas_call(
        _make_kernel(tile_rows),
        out_shape=jax.ShapeDtypeStruct((NUM_SPLITS, 8, LANE), jnp.float32),
        grid_spec=pltpu.PrefetchScalarGridSpec(
            num_scalar_prefetch=0,
            grid=(NUM_SPLITS, bpc),
            in_specs=[xy_spec, xy_spec, vis_spec],
            out_specs=out_spec,
        ),
        compiler_params=pltpu.CompilerParams(
            dimension_semantics=("parallel", "arbitrary"),
            vmem_limit_bytes=VMEM_BUDGET),
    )(pred_s, targ_s, vis_s)

    return jnp.sum(partials) / jnp.float32(n_elems)


if __name__ == "__main__":
    key = jax.random.PRNGKey(0)
    k1, k2, k3, k4, k5, k6 = jax.random.split(key, 6)

    def make_case(kp, kc, kv, B, J):
        preds = jax.random.uniform(kp, (B, J, 3), dtype=jnp.float32)   # x, y, conf
        coords = jax.random.uniform(kc, (B, J, 2), dtype=jnp.float32)
        vis = (jax.random.uniform(kv, (B, J, 1)) > 0.3).astype(jnp.float32)
        skeleton = jnp.concatenate(
            [coords, jnp.ones((B, J, 1), jnp.float32), vis,
             jnp.ones((B, J, 1), jnp.float32)], axis=-1)  # x,y,score,vis,sup
        ref = jnp.mean(jnp.abs(preds[:, :, :2] * vis - coords * vis))
        return preds, {'skeleton': skeleton}, ref

    # ---- Case 1: tiny harness shapes (B=2, J=16); force the Pallas path ----
    preds, targets, ref = make_case(k1, k2, k3, 2, 16)
    loss = jax.block_until_ready(
        pedrec_loss_head(preds, targets, use_pallas=True))
    assert jnp.allclose(loss, ref, rtol=1e-6, atol=1e-6), (loss, ref)

    # Auto-dispatch (fused-XLA at this size) must agree.
    loss_auto = jax.block_until_ready(pedrec_loss_head(preds, targets))
    assert jnp.allclose(loss_auto, ref, rtol=1e-6, atol=1e-6), (loss_auto, ref)

    # ---- Case 2: non-multiple-of-128 joint count, multi-step grid ----------
    # Tile override -> grid (2, 2): exercises the zero-init / accumulate path,
    # the "parallel" split, and the zero-padded tail with the true denominator.
    preds2, targets2, ref2 = make_case(k4, k5, k6, 33, 70)
    loss2 = jax.block_until_ready(
        pedrec_loss_head(preds2, targets2, use_pallas=True, max_tile_rows=8))
    assert jnp.allclose(loss2, ref2, rtol=1e-5, atol=1e-6), (loss2, ref2)

    print("KERNEL_OK")
</pallas_src>

<mosaic_0001>
module attributes {stable_mosaic.version = 11 : i64} {
  func.func @kernel(%arg0: i32, %arg1: i32, %arg2: memref<2x8x128xf32, #tpu.memory_space<vmem>>, %arg3: memref<2x8x128xf32, #tpu.memory_space<vmem>>, %arg4: memref<8x128xf32, #tpu.memory_space<vmem>>, %arg5: memref<1x8x128xf32, #tpu.memory_space<vmem>>) attributes {dimension_semantics = [#tpu.dimension_semantics<parallel>, #tpu.dimension_semantics<arbitrary>], iteration_bounds = array<i64: 2, 1>, scalar_prefetch = 0 : i64, scratch_operands = 0 : i64, tpu.core_type = #tpu.core_type<tc>, window_params = [{transform_indices = @transform_0, window_bounds = array<i64: 2, 8, 128>}, {transform_indices = @transform_1, window_bounds = array<i64: 2, 8, 128>}, {transform_indices = @transform_2, window_bounds = array<i64: 8, 128>}, {transform_indices = @transform_3, window_bounds = array<i64: 1, 8, 128>}]} {
    %c0_i32 = arith.constant 0 : i32
    %0 = arith.cmpi eq, %arg1, %c0_i32 : i32
    %1 = arith.extui %0 : i1 to i32
    %c0_i32_0 = arith.constant 0 : i32
    %2 = arith.cmpi ne, %1, %c0_i32_0 : i32
    scf.if %2 {
      %cst_14 = arith.constant 0.000000e+00 : f32
      %23 = vector.broadcast %cst_14 : f32 to vector<8x128xf32>
      %c0_15 = arith.constant 0 : index
      %c0_16 = arith.constant 0 : index
      %c0_17 = arith.constant 0 : index
      %24 = vector.load %arg5[%c0_15, %c0_16, %c0_17] : memref<1x8x128xf32, #tpu.memory_space<vmem>>, vector<1x8x128xf32>
      %25 = vector.shape_cast %24 : vector<1x8x128xf32> to vector<8x128xf32>
      %26 = vector.shape_cast %23 : vector<8x128xf32> to vector<1x8x128xf32>
      tpu.vector_store %arg5[%c0_15, %c0_16, %c0_17], %26 {strides = array<i32>} : memref<1x8x128xf32, #tpu.memory_space<vmem>>, vector<1x8x128xf32>,
    } else {
    }
    %c0 = arith.constant 0 : index
    %c0_1 = arith.constant 0 : index
    %c0_2 = arith.constant 0 : index
    %3 = vector.load %arg2[%c0, %c0_1, %c0_2] : memref<2x8x128xf32, #tpu.memory_space<vmem>>, vector<2x8x128xf32>
    %c0_3 = arith.constant 0 : index
    %c0_4 = arith.constant 0 : index
    %c0_5 = arith.constant 0 : index
    %4 = vector.load %arg3[%c0_3, %c0_4, %c0_5] : memref<2x8x128xf32, #tpu.memory_space<vmem>>, vector<2x8x128xf32>
    %c0_6 = arith.constant 0 : index
    %c0_7 = arith.constant 0 : index
    %5 = vector.load %arg4[%c0_6, %c0_7] : memref<8x128xf32, #tpu.memory_space<vmem>>, vector<8x128xf32>
    %6 = math.absf %5 : vector<8x128xf32>
    %7 = arith.subf %3, %4 : vector<2x8x128xf32>
    %8 = math.absf %7 : vector<2x8x128xf32>
    %9 = vector.extract_strided_slice %8 {offsets = [0, 0, 0], sizes = [1, 8, 128], strides = [1, 1, 1]} : vector<2x8x128xf32> to vector<1x8x128xf32>
    %10 = vector.shape_cast %9 : vector<1x8x128xf32> to vector<8x128xf32>
    %11 = vector.extract_strided_slice %8 {offsets = [1, 0, 0], sizes = [1, 8, 128], strides = [1, 1, 1]} : vector<2x8x128xf32> to vector<1x8x128xf32>
    %12 = vector.shape_cast %11 : vector<1x8x128xf32> to vector<8x128xf32>
    %13 = arith.addf %10, %12 : vector<8x128xf32>
    %14 = arith.mulf %13, %6 : vector<8x128xf32>
    %c0_8 = arith.constant 0 : index
    %c0_9 = arith.constant 0 : index
    %c0_10 = arith.constant 0 : index
    %15 = vector.load %arg5[%c0_8, %c0_9, %c0_10] : memref<1x8x128xf32, #tpu.memory_space<vmem>>, vector<1x8x128xf32>
    %16 = vector.shape_cast %15 : vector<1x8x128xf32> to vector<8x128xf32>
    %17 = vector.shape_cast %14 : vector<8x128xf32> to vector<1x8x128xf32>
    %cst = arith.constant dense<0.000000e+00> : vector<8x128xf32>
    %18 = vector.multi_reduction <add>, %17, %cst [0] : vector<1x8x128xf32> to vector<8x128xf32>
    %19 = arith.addf %16, %18 : vector<8x128xf32>
    %c0_11 = arith.constant 0 : index
    %c0_12 = arith.constant 0 : index
    %c0_13 = arith.constant 0 : index
    %20 = vector.load %arg5[%c0_11, %c0_12, %c0_13] : memref<1x8x128xf32, #tpu.memory_space<vmem>>, vector<1x8x128xf32>
    %21 = vector.shape_cast %20 : vector<1x8x128xf32> to vector<8x128xf32>
    %22 = vector.shape_cast %19 : vector<8x128xf32> to vector<1x8x128xf32>
    tpu.vector_store %arg5[%c0_11, %c0_12, %c0_13], %22 {strides = array<i32>} : memref<1x8x128xf32, #tpu.memory_space<vmem>>, vector<1x8x128xf32>,
    return
  }
  func.func @transform_0(%arg0: i32, %arg1: i32) -> (i32, i32, i32) {
    %c1_i32 = arith.constant 1 : i32
    %0 = arith.muli %arg0, %c1_i32 : i32
    %1 = arith.addi %0, %arg1 : i32
    %c0_i32 = arith.constant 0 : i32
    %c0_i32_0 = arith.constant 0 : i32
    %c0_i32_1 = arith.constant 0 : i32
    return %c0_i32, %1, %c0_i32_0 : i32, i32, i32
  }
  func.func @transform_1(%arg0: i32, %arg1: i32) -> (i32, i32, i32) {
    %c1_i32 = arith.constant 1 : i32
    %0 = arith.muli %arg0, %c1_i32 : i32
    %1 = arith.addi %0, %arg1 : i32
    %c0_i32 = arith.constant 0 : i32
    %c0_i32_0 = arith.constant 0 : i32
    %c0_i32_1 = arith.constant 0 : i32
    return %c0_i32, %1, %c0_i32_0 : i32, i32, i32
  }
  func.func @transform_2(%arg0: i32, %arg1: i32) -> (i32, i32) {
    %c1_i32 = arith.constant 1 : i32
    %0 = arith.muli %arg0, %c1_i32 : i32
    %1 = arith.addi %0, %arg1 : i32
    %c0_i32 = arith.constant 0 : i32
    %c0_i32_0 = arith.constant 0 : i32
    return %1, %c0_i32 : i32, i32
  }
  func.func @transform_3(%arg0: i32, %arg1: i32) -> (i32, i32, i32) {
    %c0_i32 = arith.constant 0 : i32
    %c0_i32_0 = arith.constant 0 : i32
    %c0_i32_1 = arith.constant 0 : i32
    return %arg0, %c0_i32, %c0_i32_0 : i32, i32, i32
  }
}

</mosaic_0001>

<bundles_post_ra>
// kernel: tpu_custom_call.1
= control target key start
LH: loop header
LB: loop body
LE: loop exit
PB: predicated region body
PF: predicated region fallthrough
CT: control target
= control target key end

     0   :  { %s924_s0 = inlined_call_operand.hbm [shape: f32[2,16,128], index: 0, kind: input, shape index: {}]   ;;  %s925_s1 = inlined_call_operand.hbm [shape: f32[2,16,128], index: 1, kind: input, shape index: {}]   ;;  %s926_s2 = inlined_call_operand.hbm [shape: f32[16,128], index: 2, kind: input, shape index: {}]   ;;  %s927_s3 = inlined_call_operand.hbm [shape: f32[2,8,128], index: 3, kind: output, shape index: {}]  }
   0x1   :  { %931 = sst [smem:[#allocation15_spill]] %s924_s0 }
   0x2   :  { %932 = sst [smem:[#allocation16_spill]] %s925_s1 }
   0x3   :  { %8 = vsyncpa [#allocation3], 0 }
   0x4   :  { %10 = vsyncpa [#allocation3 + $0x1], 0 }
   0x5   :  { %11 = vsyncpa [#allocation6], 0 }
   0x6   :  { %13 = vsyncpa [#allocation6 + $0x1], 0 }
   0x7   :  { %14 = vsyncpa [#allocation4], 0 }
   0x8   :  { %16 = vsyncpa [#allocation4 + $0x1], 0  ;;  %s736_s12 = smov 0   ;;  %s738_s13 = smov 0  }
   0x9   :  { %s740_s14 = smov 0   ;;  %s742_s15 = smov 0  }
   0xa   :  { %s744_s16 = smov 0   ;;  %s746_s17 = smov 0  }
   0xb LB: > { %933 = sst [smem:[#allocation12_spill]] %s703_s16  ;;  %s767_s18 = sadd.s32 4294967295, %s707_s17   ;;  %s707_s17 = sphi %s746_s17, %s22_s17   ;;  %s703_s16 = sphi %s744_s16, %s948_s16   ;;  %s699_s15 = sphi %s742_s15, %s947_s15   ;;  %s695_s14 = sphi %s740_s14, %s951_s14   ;;  %s691_s13 = sphi %s738_s13, %s950_s13   ;;  %s687_s12 = sphi %s736_s12, %s949_s12  }
   0xc   : > { %s445_s19 = sadd.s32 4294967294, %s707_s17   ;;  %s34_s20 = sadd.s32 1, %s703_s16 }
   0xd   : > { %s43_s21 = sadd.s32 1, %s695_s14  ;;  %p36_p0 = scmp.ge.s32.totalorder %s34_s20, 2 }
   0xe   : > { %p50_p1 = scmp.ne.s32.totalorder %s695_s14, %s691_s13  ;;  %p51_p2 = scmp.eq.s32.totalorder %s707_s17, 0 }
   0xf   : > { %p56_p3 = scmp.ne.s32.totalorder %s691_s13, %s687_s12  ;;  %s953_s20 = smov (%p36_p0, %s34_s20), 0 }
  0x10   : > { %934 = sst [smem:[#allocation13_spill]] %s953_s20  ;;  %p779_p4 = por %p51_p2, %p50_p1 }
  0x11   : > { %p57_p5 = scmp.eq.s32.totalorder %s767_s18, 0  ;;  %s40_s23 = ssub.s32 %s703_s16, %s953_s20 }
  0x12   : > { %p136_p6 = scmp.eq.s32.totalorder %s767_s18, 1  ;;  %p41_p7 = scmp.eq.s32.totalorder %s40_s23, 0 }
  0x13   : > { %p787_p8 = por %p57_p5, %p56_p3  ;;  %p142_p10 = scmp.eq.s32.totalorder %s445_s19, 1 }
  0x14   : > { %p791_p9 = por %p136_p6, %p50_p1  ;;  %p485_p13 = scmp.lt.s32.totalorder %s707_s17, 2 }
  0x15   : > { %s796_s26 = scalar_select %p41_p7, %s695_s14, %s43_s21  }
  0x16   : > { %p798_p11 = por %p142_p10, %p56_p3  ;;  %s805_s28 = sand.u32 1, %s695_s14  }
  0x17   : > { %938 = sst [smem:[#allocation14_spill]] %s796_s26  ;;  %s448_s29 = sshll.u32 %s805_s28, 4 }
  0x18   : > { %s809_s30 = sshll.u32 %s703_s16, 7  ;;  %p813_p0 = pnand %p485_p13, %p779_p4 }
  0x19   : > { %s183_s5 = sand.u32 1, %s707_s17   ;;  %s941_s1 = sld [smem:[#allocation16_spill]] }
  0x1a   : > { %s187_s9 = scalar_lea.vmem [#allocation5], %s448_s29  ;;  %p454_p1 = scmp.ge.s32.totalorder %s707_s17, 1 }
  0x1b   : > { %s194_s10 = sshll.u32 %s187_s9, 4  ;;  %s825_s11 = scalar_lea.sflag [#allocation6], %s183_s5  ;;  %s195_s10 = int_to_ptr.vmem [resolvable:$true] %s194_s10 }
  0x1c   : > { %p541_p2 = pneg %p813_p0  ;;  %s552_s19 = scalar_lea.vmem %s195_s10, 256 }
  0x1d   : > { %p553_p3 = scmp.ne.s32.totalorder %s195_s10, %s552_s19  ;;  %s709_s21 = smov [#allocation5]  }
  0x1e   : > { %s557_s22 = sshll.u32 %s709_s21, 4  ;;  %s558_s22 = int_to_ptr.vmem [resolvable:$false] %s557_s22 }
  0x1f   : > { %s193_s8 = scalar_lea.hbm %s941_s1, %s809_s30  ;;  %p555_p4 = pnand %p553_p3, %p541_p2 }
  0x20   : > { %s559_s23 = scalar_lea.vmem %s558_s22, 512  ;;  %p560_p6 = scmp.lt.s32.totalorder %s195_s10, %s558_s22 }
  0x21   : > { %p556_p5 = pneg %p555_p4  ;;  %p561_p7 = scmp.lt.s32.totalorder %s559_s23, %s552_s19 }
  0x23   : > { %p562_p10 = por %p561_p7, %p560_p6 }
  0x25   : > { %p563_p13 = pnand %p562_p10, %p556_p5 }
  0x27   : > { %566 = shalt.err (!%p563_p13)
}
  0x28   : > { %s930_s6 = smov 256   ;;  %s711_s5 = smov 128  }
  0x29   : > { %s712_s7 = smov 8   ;;  %p221_p3 = scmp.lt.s32.totalorder %s707_s17, 3 }
  0x2a   : > { %477 = dma.hbm_to_vmem [thread:$0]  (!%p813_p0), %s193_s8, 256, %s195_s10, %s825_s11, %s930_s6, %s711_s5, %s712_s7  }
  0x2b   : > { %p839_p4 = pnand %p454_p1, %p221_p3  ;;  %s943_s0 = sld [smem:[#allocation15_spill]] }
  0x2c   : > { %s166_s23 = scalar_lea.vmem [#allocation2], %s448_s29  ;;  %s452_s20 = sshll.u32 %s805_s28, 3 }
  0x2d   : > { %s173_s1 = sshll.u32 %s166_s23, 4  ;;  %s163_s16 = scalar_lea.sflag [#allocation3], %s805_s28  ;;  %s174_s1 = int_to_ptr.vmem [resolvable:$true] %s173_s1 }
  0x2e   : > { %s580_s26 = scalar_lea.vmem %s174_s1, 256  ;;  %s713_s8 = smov [#allocation2]  }
  0x2f   : > { %p581_p5 = scmp.ne.s32.totalorder %s174_s1, %s580_s26  ;;  %s585_s10 = sshll.u32 %s713_s8, 4  ;;  %s586_s10 = int_to_ptr.vmem [resolvable:$false] %s585_s10 }
  0x30   : > { %s587_s6 = scalar_lea.vmem %s586_s10, 512  ;;  %p588_p1 = scmp.lt.s32.totalorder %s174_s1, %s586_s10 }
  0x31   : > { %s172_s22 = scalar_lea.hbm %s943_s0, %s809_s30  ;;  %p583_p6 = pnand %p581_p5, %p541_p2 }
  0x32   : > { %p589_p10 = scmp.lt.s32.totalorder %s587_s6, %s580_s26 }
  0x33   : > { %p584_p7 = pneg %p583_p6 }
  0x34   : > { %p590_p13 = por %p589_p10, %p588_p1 }
  0x36   : > { %p591_p3 = pnand %p590_p13, %p584_p7 }
  0x38   : > { %594 = shalt.err (!%p591_p3)
}
  0x39   : > { %s944_s29 = smov 256   ;;  %s214_s21 = scalar_lea.hbm %s926_s2, %s809_s30 }
  0x3a   : > { %474 = dma.hbm_to_vmem [thread:$0]  (!%p813_p0), %s172_s22, 256, %s174_s1, %s163_s16, %s944_s29, %s711_s5, %s712_s7  }
  0x3b   : > { %s208_s23 = scalar_lea.vmem [#allocation7], %s452_s20  ;;  %s714_s26 = smov [#allocation7]  }
  0x3c   : > { %s216_s0 = sshll.u32 %s208_s23, 4  ;;  %s613_s6 = sshll.u32 %s714_s26, 4  ;;  %s217_s0 = int_to_ptr.vmem [resolvable:$true] %s216_s0  ;;  %s614_s6 = int_to_ptr.vmem [resolvable:$false] %s613_s6 }
  0x3d   : > { %s608_s8 = scalar_lea.vmem %s217_s0, 128  ;;  %s615_s10 = scalar_lea.vmem %s614_s6, 256 }
  0x3e   : > { %p609_p5 = scmp.ne.s32.totalorder %s217_s0, %s608_s8  ;;  %p616_p1 = scmp.lt.s32.totalorder %s217_s0, %s614_s6 }
  0x3f   : > { %p617_p10 = scmp.lt.s32.totalorder %s615_s10, %s608_s8 }
  0x40   : > { %p611_p6 = pnand %p609_p5, %p541_p2 }
  0x41   : > { %p618_p13 = por %p617_p10, %p616_p1 }
  0x42   : > { %p612_p7 = pneg %p611_p6 }
  0x44   : > { %p619_p3 = pnand %p618_p13, %p612_p7 }
  0x46   : > { %622 = shalt.err (!%p619_p3)
}
  0x47   : > { %480 = dma.hbm_to_vmem [thread:$0]  (!%p813_p0), %s214_s21, 128, %s217_s0, %s825_s11  }
  0x48   : > { %225 = sbr.rel (%p839_p4) target bundleno = 106 (0x6a), region = 32  ;;  %s870_s1 = sand.u32 (!%p839_p4), 1, %s691_s13  }
  0x49   : > { %s455_s16 = sshll.u32 (!%p839_p4), %s870_s1, 4  ;;  %s228_s20 = scalar_lea.sflag (!%p839_p4), [#allocation3], %s870_s1 }
  0x4a   : > { %s231_s30 = scalar_lea.vmem (!%p839_p4), [#allocation2], %s455_s16 }
  0x4d   : > { %674 = dma.done.wait (%p787_p8), %s228_s20, 256  }
  0x4e   : > { %676 = vsyncadd (%p787_p8), %s228_s20, 4294967040  ;;  %s236_s0 = sand.u32 1, %s767_s18   ;;  %s240_s11 = scalar_lea.vmem [#allocation5], %s455_s16 }
  0x4f   : > { %s237_s4 = scalar_lea.sflag [#allocation6], %s236_s0 }
  0x50   : > { %678 = dma.done.wait (%p787_p8), %s237_s4, 384  }
  0x51   : > { %680 = vsyncadd (%p787_p8), %s237_s4, 4294966912  ;;  %s457_s5 = sshll.u32 %s870_s1, 3  ;;  %v290_v0 = vld [vmem:[%s231_s30] sm:$0xff]  ;;  %v291_v1 = vld [vmem:[%s231_s30 + $0x8] sm:$0xff]  ;;  %s460_s18 = sshll.u32 %s699_s15, 7 }
  0x52   : > { %s249_s7 = scalar_lea.vmem [#allocation7], %s457_s5  ;;  %v292_v3 = vld [vmem:[%s240_s11] sm:$0xff]  ;;  %v293_v4 = vld [vmem:[%s240_s11 + $0x8] sm:$0xff]  ;;  %s281_s24 = scalar_lea.vmem [#allocation8], %s457_s5 }
  0x53   : > { %v294_v2 = vld [vmem:[%s249_s7] sm:$0xff]  ;;  %v296_v5 = vsub.f32 %v290_v0, %v292_v3  ;;  %v297_v6 = vsub.f32 %v291_v1, %v293_v4  ;;  %s320_s9 = sshll.u32 %s281_s24, 4  ;;  %s318_s28 = scalar_lea.hbm %s927_s3, %s460_s18  ;;  %s321_s9 = int_to_ptr.vmem [resolvable:$true] %s320_s9 }
  0x54   : > { %v295_v7 = vand.u32 2147483647, %v294_v2  ;;  %s307_s19 = scalar_lea.sflag [#allocation4], %s870_s1  ;;  %s623_s21 = scalar_lea.vmem %s321_s9, 128 }
  0x55   : > { %v298_v8 = vand.u32 2147483647, %v296_v5  ;;  %v299_v9 = vand.u32 2147483647, %v297_v6  ;;  %p624_p8 = scmp.ne.s32.totalorder %s321_s9, %s623_s21  ;;  %s715_s23 = smov [#allocation8]  }
  0x56   : > { %s627_s8 = sshll.u32 %s715_s23, 4  ;;  %s628_s8 = int_to_ptr.vmem [resolvable:$false] %s627_s8 }
  0x57   : > { %v300_v10 = vadd.f32 %v299_v9, %v298_v8  ;;  %p625_p0 = pnand %p624_p8, %p791_p9  ;;  %s629_s26 = scalar_lea.vmem %s628_s8, 256 }
  0x58   : > { %p630_p4 = scmp.lt.s32.totalorder %s321_s9, %s628_s8  ;;  %p631_p5 = scmp.lt.s32.totalorder %s629_s26, %s623_s21 }
  0x59   : > { %v301_v11 = vmul.f32 %v300_v10, %v295_v7  ;;  %p626_p2 = pneg %p625_p0 }
  0x5a   : > { %p632_p6 = por %p631_p5, %p630_p4 }
  0x5b   : > { %305 = vst [vmem:[%s281_s24] sm:$0xff] %v301_v11 }
  0x5c   : > { %p633_p7 = pnand %p632_p6, %p626_p2 }
  0x5e   : > { %636 = shalt.err (!%p633_p7)
}
  0x5f   : > { %s637_s15 = scalar_lea.hbm %s318_s28, 128  ;;  %s641_s1 = scalar_lea.hbm %s927_s3, 256 }
  0x60   : > { %p638_p1 = scmp.ne.s32.totalorder %s318_s28, %s637_s15  ;;  %p642_p3 = scmp.lt.s32.totalorder %s318_s28, %s927_s3 }
  0x61   : > { %p643_p8 = scmp.lt.s32.totalorder %s641_s1, %s637_s15 }
  0x62   : > { %p639_p10 = pnand %p638_p1, %p791_p9 }
  0x63   : > { %p644_p0 = por %p643_p8, %p642_p3 }
  0x64   : > { %p640_p13 = pneg %p639_p10 }
  0x66   : > { %p645_p12 = pnand %p644_p0, %p640_p13 }
  0x68   : > { %648 = shalt.err (!%p645_p12)
}
  0x69   : > { %469 = dma.vmem_to_hbm [thread:$0]  (%p791_p9), %s321_s9, 128, %s318_s28, %s307_s19  }
  0x6a PF: > { %s332_s30 = sand.u32 1, %s687_s12   ;;  %p945_p2 = scmp.ge.s32.totalorder %s707_s17, 2 }
  0x6b   : > { %s333_s0 = scalar_lea.sflag [#allocation4], %s332_s30 }
  0x6c   : > { %p482_p4 = pnand %p945_p2, %p798_p11 }
  0x6e   : > { %p483_p5 = pneg %p482_p4 }
  0x70   : > { %682 = dma.done.wait (%p483_p5), %s333_s0, 128  }
  0x71   : > { %684 = vsyncadd (%p483_p5), %s333_s0, 4294967168  ;;  %s22_s17 = sadd.s32 1, %s707_s17   ;;  %s946_s4 = sld [smem:[#allocation14_spill]] }
  0x72   : > { %p19_p6 = scmp.ge.s32.totalorder %s22_s17, 4   ;;  %s947_s15 = sld [smem:[#allocation12_spill]] }
  0x73   : > { %s948_s16 = sld [smem:[#allocation13_spill]]  ;;  %s949_s12 = smov %s691_s13 }
  0x74   : > { %s950_s13 = smov %s695_s14  ;;  %21 = sbr.rel (!%p19_p6) target bundleno = 11 (0xb), region = 105 }
  0x77   : > { %s951_s14 = smov %s946_s4 }
  0x79   :  { %338 = vsyncpa [#allocation3], 1 }
  0x7a   :  { %340 = vsyncpa [#allocation3 + $0x1], 1 }
  0x7b   :  { %341 = vsyncpa [#allocation6], 1 }
  0x7c   :  { %343 = vsyncpa [#allocation6 + $0x1], 1 }
  0x7d   :  { %344 = vsyncpa [#allocation4], 1 }
  0x7e   :  { %346 = vsyncpa [#allocation4 + $0x1], 1 }

</bundles_post_ra>
